<compile_context>
chip_gen: v7x
topology: tpu7x:2x2x1
jax: 0.10.0
libtpu: 0.0.40
codegen_flags: <defaults>
</compile_context>

<pallas_src>
import numpy as np
import jax
import jax.numpy as jnp
from jax.experimental import pallas as pl
from jax.experimental.pallas import tpu as pltpu


def make_pos_enc(d_model: int, maxlen: int, min_freq: float = 1e-4,
                 dtype=jnp.float32):
    """Deterministic buffer init — mirrors PositionalEncoding._get_pos_enc."""
    position = np.arange(maxlen)
    freqs = min_freq ** (2 * (np.arange(d_model) // 2) / d_model)
    pos_enc = position[:, None] * freqs[None]
    pos_enc[:, ::2] = np.cos(pos_enc[:, ::2])
    pos_enc[:, 1::2] = np.sin(pos_enc[:, 1::2])
    return jnp.asarray(pos_enc, dtype=dtype)


def _round_up(x: int, m: int) -> int:
    return ((x + m - 1) // m) * m


# ---------------------------------------------------------------------------
# Kernels (both fully vectorized per block; no per-row copies).
# ---------------------------------------------------------------------------
def _gather_take_kernel(idx_ref, table_ref, out_ref):
    """Gather tb table rows via a vectorized dynamic (sublane) gather."""
    maxlen, d = table_ref.shape
    tb = out_ref.shape[0]
    idx = jnp.clip(idx_ref[...], 0, maxlen - 1)            # (tb, 1) int32, VPU clip
    idx_mat = jnp.broadcast_to(idx, (tb, d))                # broadcast along lanes
    out_ref[...] = jnp.take_along_axis(table_ref[...], idx_mat,
                                       axis=0).astype(out_ref.dtype)


def _gather_onehot_kernel(idx_ref, table_ref, out_ref):
    """Fallback: gather tb rows via a one-hot MXU matmul (MXU is idle here)."""
    maxlen = table_ref.shape[0]
    tb = out_ref.shape[0]
    idx = jnp.clip(idx_ref[...], 0, maxlen - 1)             # (tb, 1)
    cols = jax.lax.broadcasted_iota(jnp.int32, (tb, maxlen), 1)
    onehot = (cols == idx).astype(table_ref.dtype)          # (tb, maxlen), exact {0,1}
    out_ref[...] = jnp.dot(onehot, table_ref[...],
                           precision=jax.lax.Precision.HIGHEST,
                           preferred_element_type=jnp.float32
                           ).astype(out_ref.dtype)


# ---------------------------------------------------------------------------
# pallas_call builder shared by both kernels.
# ---------------------------------------------------------------------------
def _build_gather_call(kernel_fn, n_pad, tb, maxlen, d_pad, dtype):
    num_blocks = n_pad // tb
    itemsize = jnp.dtype(dtype).itemsize
    table_bytes = maxlen * d_pad * itemsize
    out_blk_bytes = tb * d_pad * itemsize
    # VMEM budget: pipeline double-buffers the (constant-index) table + the
    # output/index blocks; leave room for the one-hot intermediate.
    vmem_est = (2 * table_bytes + 2 * out_blk_bytes + 2 * tb * 4
                + tb * maxlen * 4 + (1 << 20))
    vmem_limit = int(min(64 << 20, max(32 << 20, vmem_est)))

    return pl.pallas_call(
        kernel_fn,
        out_shape=jax.ShapeDtypeStruct((n_pad, d_pad), dtype),
        grid_spec=pltpu.PrefetchScalarGridSpec(
            num_scalar_prefetch=0,
            grid=(num_blocks,),
            in_specs=[
                # (tb, 1) int32 index block, vectorized consumption in-kernel.
                pl.BlockSpec((tb, 1), lambda i: (i, 0)),
                # Whole table, constant block index -> DMA'd from HBM once and
                # kept resident in VMEM across grid steps.
                pl.BlockSpec((maxlen, d_pad), lambda i: (0, 0)),
            ],
            out_specs=pl.BlockSpec((tb, d_pad), lambda i: (i, 0)),
        ),
        compiler_params=pltpu.CompilerParams(
            # "parallel": each output block is written by exactly one grid
            # step, so v7x may shard the row axis across its 2 TensorCores.
            # TODO(synk): evaluate pltpu.CORE_PARALLEL here for explicit 2-TC
            # sharding on v7x.
            dimension_semantics=("parallel",),
            vmem_limit_bytes=vmem_limit),
        cost_estimate=pl.CostEstimate(
            flops=2 * n_pad * maxlen * d_pad,          # upper bound (one-hot path)
            transcendentals=0,
            bytes_accessed=table_bytes + n_pad * 4 + n_pad * d_pad * itemsize),
    )


# Cached capability probe: does the dynamic sublane gather lower on this build?
_TAKE_GATHER_SUPPORTED = None


def positional_encoding_lookup(pos_enc: jax.Array, x: jax.Array) -> jax.Array:
    """Pallas equivalent of `pos_enc[x]` for an integer index tensor x."""
    global _TAKE_GATHER_SUPPORTED

    maxlen, d_model = pos_enc.shape
    dtype = pos_enc.dtype
    itemsize = jnp.dtype(dtype).itemsize

    # Lane-dense output: pad the feature dim to a multiple of 128 if needed.
    d_pad = _round_up(d_model, 128)
    table = pos_enc if d_pad == d_model else jnp.pad(
        pos_enc, ((0, 0), (0, d_pad - d_model)))

    flat_idx = x.reshape(-1).astype(jnp.int32)
    n = int(flat_idx.shape[0])

    # Rows per grid step: large (amortize ~0.35us/step, big writeback DMAs),
    # multiple of the sublane packing for this dtype (8 for f32, 16 for bf16).
    sub = max(8, 32 // itemsize)
    tb = min(256, _round_up(n, sub))
    n_pad = _round_up(n, tb)

    if n_pad != n:
        flat_idx = jnp.concatenate(
            [flat_idx, jnp.zeros((n_pad - n,), dtype=jnp.int32)])
    idx_2d = flat_idx.reshape(n_pad, 1)

    args = (idx_2d, table)
    out = None

    if _TAKE_GATHER_SUPPORTED is not False:
        try:
            call = _build_gather_call(_gather_take_kernel, n_pad, tb, maxlen,
                                      d_pad, dtype)
            out = jax.block_until_ready(call(*args))
            _TAKE_GATHER_SUPPORTED = True
        except Exception:
            _TAKE_GATHER_SUPPORTED = False
            out = None

    if out is None:
        call = _build_gather_call(_gather_onehot_kernel, n_pad, tb, maxlen,
                                  d_pad, dtype)
        out = call(*args)

    if n_pad != n:
        out = out[:n]
    if d_pad != d_model:
        out = out[:, :d_model]
    return out.reshape(x.shape + (d_model,))


if __name__ == "__main__":
    d_model, maxlen = 128, 64
    pos_enc = make_pos_enc(d_model=d_model, maxlen=maxlen, min_freq=1e-4)

    key = jax.random.PRNGKey(0)
    # e.g. a batch of diffusion timesteps, shape (2, 8)
    x = jax.random.randint(key, (2, 8), 0, maxlen, dtype=jnp.int32)

    y = positional_encoding_lookup(pos_enc, x)
    y = jax.block_until_ready(y)

    # reference (plain JAX fancy-indexing == torch's pos_enc[x])
    ref = pos_enc[x]
    assert y.shape == (2, 8, d_model), y.shape
    np.testing.assert_allclose(np.asarray(y), np.asarray(ref),
                               rtol=1e-6, atol=1e-6)

    print("KERNEL_OK")
</pallas_src>

<mosaic_0001>
module attributes {stable_mosaic.version = 11 : i64} {
  func.func @_gather_take_kernel(%arg0: i32, %arg1: memref<16x1xi32, #tpu.memory_space<vmem>>, %arg2: memref<64x128xf32, #tpu.memory_space<vmem>>, %arg3: memref<16x128xf32, #tpu.memory_space<vmem>>) attributes {dimension_semantics = [#tpu.dimension_semantics<parallel>], iteration_bounds = array<i64: 1>, scalar_prefetch = 0 : i64, scratch_operands = 0 : i64, tpu.core_type = #tpu.core_type<tc>, window_params = [{transform_indices = @transform_0, window_bounds = array<i64: 16, 1>}, {pipeline_mode = #tpu.pipeline_mode<synchronous>, transform_indices = @transform_1, window_bounds = array<i64: 64, 128>}, {transform_indices = @transform_2, window_bounds = array<i64: 16, 128>}]} {
    %c0 = arith.constant 0 : index
    %c0_0 = arith.constant 0 : index
    %0 = vector.load %arg1[%c0, %c0_0] : memref<16x1xi32, #tpu.memory_space<vmem>>, vector<16x1xi32>
    %c0_i32 = arith.constant 0 : i32
    %c63_i32 = arith.constant 63 : i32
    %1 = vector.broadcast %c0_i32 : i32 to vector<16x1xi32>
    %2 = arith.maxsi %1, %0 : vector<16x1xi32>
    %3 = vector.broadcast %c63_i32 : i32 to vector<16x1xi32>
    %4 = arith.minsi %3, %2 : vector<16x1xi32>
    %5 = vector.shape_cast %4 : vector<16x1xi32> to vector<16x1xi32>
    %6 = vector.broadcast %5 : vector<16x1xi32> to vector<16x128xi32>
    %c0_1 = arith.constant 0 : index
    %c0_2 = arith.constant 0 : index
    %7 = vector.load %arg2[%c0_1, %c0_2] : memref<64x128xf32, #tpu.memory_space<vmem>>, vector<64x128xf32>
    %c0_i32_3 = arith.constant 0 : i32
    %8 = vector.broadcast %c0_i32_3 : i32 to vector<16x128xi32>
    %9 = arith.cmpi slt, %6, %8 : vector<16x128xi32>
    %c64_i32 = arith.constant 64 : i32
    %10 = vector.broadcast %c64_i32 : i32 to vector<16x128xi32>
    %11 = arith.addi %6, %10 : vector<16x128xi32>
    %12 = arith.select %9, %11, %6 : vector<16x128xi1>, vector<16x128xi32>
    %13 = vector.shape_cast %12 : vector<16x128xi32> to vector<16x128x1xi32>
    %14 = vector.shape_cast %13 : vector<16x128x1xi32> to vector<16x128xi32>
    %15 = tpu.dynamic_gather %7[%14] in [0] : vector<64x128xf32>, vector<16x128xi32> -> vector<16x128xf32>
    %c0_4 = arith.constant 0 : index
    %c0_5 = arith.constant 0 : index
    %16 = vector.load %arg3[%c0_4, %c0_5] : memref<16x128xf32, #tpu.memory_space<vmem>>, vector<16x128xf32>
    tpu.vector_store %arg3[%c0_4, %c0_5], %15 {strides = array<i32>} : memref<16x128xf32, #tpu.memory_space<vmem>>, vector<16x128xf32>,
    return
  }
  func.func @transform_0(%arg0: i32) -> (i32, i32) {
    %c0_i32 = arith.constant 0 : i32
    %c0_i32_0 = arith.constant 0 : i32
    return %arg0, %c0_i32 : i32, i32
  }
  func.func @transform_1(%arg0: i32) -> (i32, i32) {
    %c0_i32 = arith.constant 0 : i32
    %c0_i32_0 = arith.constant 0 : i32
    %c0_i32_1 = arith.constant 0 : i32
    return %c0_i32, %c0_i32_0 : i32, i32
  }
  func.func @transform_2(%arg0: i32) -> (i32, i32) {
    %c0_i32 = arith.constant 0 : i32
    %c0_i32_0 = arith.constant 0 : i32
    return %arg0, %c0_i32 : i32, i32
  }
}

module attributes {stable_mosaic.version = 11 : i64} {
  func.func @_gather_onehot_kernel(%arg0: i32, %arg1: memref<16x1xi32, #tpu.memory_space<vmem>>, %arg2: memref<64x128xf32, #tpu.memory_space<vmem>>, %arg3: memref<16x128xf32, #tpu.memory_space<vmem>>) attributes {dimension_semantics = [#tpu.dimension_semantics<parallel>], iteration_bounds = array<i64: 1>, scalar_prefetch = 0 : i64, scratch_operands = 0 : i64, tpu.core_type = #tpu.core_type<tc>, window_params = [{transform_indices = @transform_0, window_bounds = array<i64: 16, 1>}, {pipeline_mode = #tpu.pipeline_mode<synchronous>, transform_indices = @transform_1, window_bounds = array<i64: 64, 128>}, {transform_indices = @transform_2, window_bounds = array<i64: 16, 128>}]} {
    %c0 = arith.constant 0 : index
    %c0_0 = arith.constant 0 : index
    %0 = vector.load %arg1[%c0, %c0_0] : memref<16x1xi32, #tpu.memory_space<vmem>>, vector<16x1xi32>
    %c0_i32 = arith.constant 0 : i32
    %c63_i32 = arith.constant 63 : i32
    %1 = vector.broadcast %c0_i32 : i32 to vector<16x1xi32>
    %2 = arith.maxsi %1, %0 : vector<16x1xi32>
    %3 = vector.broadcast %c63_i32 : i32 to vector<16x1xi32>
    %4 = arith.minsi %3, %2 : vector<16x1xi32>
    %5 = tpu.iota {dimensions = array<i32: 1>} : vector<16x64xi32>
    %6 = vector.broadcast %4 : vector<16x1xi32> to vector<16x64xi32>
    %7 = arith.cmpi eq, %5, %6 : vector<16x64xi32>
    %8 = arith.extui %7 : vector<16x64xi1> to vector<16x64xi32>
    %9 = arith.sitofp %8 : vector<16x64xi32> to vector<16x64xf32>
    %c0_1 = arith.constant 0 : index
    %c0_2 = arith.constant 0 : index
    %10 = vector.load %arg2[%c0_1, %c0_2] : memref<64x128xf32, #tpu.memory_space<vmem>>, vector<64x128xf32>
    %cst = arith.constant dense<0.000000e+00> : vector<16x128xf32>
    %11 = tpu.matmul %9, %10, %cst {dimension_numbers = #tpu.dot_dimension_numbers<[1], [0], [0], [1], [0, 0, 1, 1], [], []>, precision = #tpu.contract_precision<fp32>} : vector<16x64xf32>, vector<64x128xf32>, vector<16x128xf32> -> vector<16x128xf32>
    %c0_3 = arith.constant 0 : index
    %c0_4 = arith.constant 0 : index
    %12 = vector.load %arg3[%c0_3, %c0_4] : memref<16x128xf32, #tpu.memory_space<vmem>>, vector<16x128xf32>
    tpu.vector_store %arg3[%c0_3, %c0_4], %11 {strides = array<i32>} : memref<16x128xf32, #tpu.memory_space<vmem>>, vector<16x128xf32>,
    return
  }
  func.func @transform_0(%arg0: i32) -> (i32, i32) {
    %c0_i32 = arith.constant 0 : i32
    %c0_i32_0 = arith.constant 0 : i32
    return %arg0, %c0_i32 : i32, i32
  }
  func.func @transform_1(%arg0: i32) -> (i32, i32) {
    %c0_i32 = arith.constant 0 : i32
    %c0_i32_0 = arith.constant 0 : i32
    %c0_i32_1 = arith.constant 0 : i32
    return %c0_i32, %c0_i32_0 : i32, i32
  }
  func.func @transform_2(%arg0: i32) -> (i32, i32) {
    %c0_i32 = arith.constant 0 : i32
    %c0_i32_0 = arith.constant 0 : i32
    return %arg0, %c0_i32 : i32, i32
  }
}

</mosaic_0001>

<bundles_post_ra>
// kernel: tpu_custom_call.1
= control target key start
LH: loop header
LB: loop body
LE: loop exit
PB: predicated region body
PF: predicated region fallthrough
CT: control target
= control target key end

     0   :  { %7 = vsyncpa [#allocation3], 0  ;;  %s1108_s0 = inlined_call_operand.vmem [shape: s32[16,1], index: 0, kind: input, shape index: {}]   ;;  %s1109_s1 = inlined_call_operand.hbm [shape: f32[64,128], index: 1, kind: input, shape index: {}]   ;;  %s1110_s2 = inlined_call_operand.hbm [shape: f32[16,128], index: 2, kind: output, shape index: {}]  }
   0x1   :  { %8 = vsyncpa [#allocation4], 0  ;;  %s1007_s9 = smov [#allocation2]   ;;  %s959_s13 = scalar_lea.hbm %s1109_s1, 1024 }
   0x2   :  { %s16_s10 = sshll.u32 %s1007_s9, 4  ;;  %p960_p0 = scmp.ne.s32.totalorder %s1109_s1, %s959_s13  ;;  %s17_s10 = int_to_ptr.vmem [resolvable:$true] %s16_s10 }
   0x3   :  { %p963_p1 = scmp.lt.u32.totalorder %s959_s13, %s1109_s1 }
   0x5   :  { %p965_p2 = pnand %p963_p1, %p960_p0 }
   0x7   :  { %968 = shalt.err (!%p965_p2)
}
   0x8   :  { %s969_s18 = scalar_lea.vmem %s17_s10, 1024  ;;  %p974_p4 = scmp.lt.s32.totalorder %s17_s10, %s17_s10 }
   0x9   :  { %p970_p3 = scmp.ne.s32.totalorder %s17_s10, %s969_s18  ;;  %p975_p5 = scmp.lt.s32.totalorder %s969_s18, %s969_s18 }
   0xb   :  { %p976_p6 = por %p975_p5, %p974_p4 }
   0xd   :  { %p977_p7 = pnand %p976_p6, %p970_p3 }
   0xf   :  { %980 = shalt.err (!%p977_p7)
}
  0x10   :  { %s1008_s19 = smov 128   ;;  %s1009_s20 = smov 8  }
  0x11   :  { %22 = dma.hbm_to_vmem [thread:$0]  %s1109_s1, 1024, %s17_s10, [#allocation3], %s1008_s19, %s1008_s19, %s1009_s20  }
  0x12   :  { %1003 = dma.done.wait [#allocation3], 1024  }
  0x13   :  { %1004 = vsyncadd [#allocation3], 4294966272  ;;  %v1010_v0 = vmov 0   ;;  %v26_v1 = vld [vmem:[%s1108_s0] sm:$0xff]  ;;  %v27_v2 = vld [vmem:[%s1108_s0 + $0x8] sm:$0xff]  ;;  %vm58_vm4 = vcmask 523264  }
  0x14   :  { %958 = vset.pattern.permute.xlu0 %v1010_v0  ;;  %v50_v3 = vld [vmem:[#allocation2] sm:$0xff]  ;;  %vm28_vm0 = vcmp.gt.s32.totalorder %v26_v1, 0  ;;  %vm30_vm1 = vcmp.gt.s32.totalorder %v27_v2, 0  ;;  %v51_v4 = vld [vmem:[#allocation2 + $0x8] sm:$0xff]  ;;  %v52_v6 = vld [vmem:[#allocation2 + $0x10] sm:$0xff]  ;;  %s1012_s0 = smov [#allocation5]  }
  0x15   :  { %v66_v5 = vand.u32 4294901760, %v50_v3  ;;  %v53_v7 = vld [vmem:[#allocation2 + $0x18] sm:$0xff]  ;;  %v29_v8 = vsel %vm28_vm0, %v26_v1, 0  ;;  %v31_v9 = vsel %vm30_vm1, %v27_v2, 0  ;;  %v69_v10 = vand.u32 4294901760, %v51_v4  ;;  %v54_v12 = vld [vmem:[#allocation2 + $0x20] sm:$0xff] }
  0x16   :  { %v72_v11 = vand.u32 4294901760, %v52_v6  ;;  %v55_v13 = vld [vmem:[#allocation2 + $0x28] sm:$0xff]  ;;  %vm32_vm2 = vcmp.lt.s32.totalorder %v29_v8, 63  ;;  %vm34_vm3 = vcmp.lt.s32.totalorder %v31_v9, 63  ;;  %v75_v14 = vand.u32 4294901760, %v53_v7  ;;  %v56_v21 = vld [vmem:[#allocation2 + $0x30] sm:$0xff] }
  0x17   :  { %v33_v15 = vsel %vm32_vm2, %v29_v8, 63  ;;  %v1049_v16 = vpack.c.bf16 %v69_v10, %v66_v5  ;;  %v78_v17 = vand.u32 4294901760, %v54_v12  ;;  %v81_v18 = vand.u32 4294901760, %v55_v13  ;;  %v57_v22 = vld [vmem:[#allocation2 + $0x38] sm:$0xff]  ;;  %s652_s1 = sshll.u32 %s1012_s0, 4  ;;  %s653_s1 = int_to_ptr.vmem [resolvable:$true] %s652_s1 }
  0x18   :  { %39 = vperm.xlu0 %958, %v33_v15   ;;  %v1051_v19 = vpack.c.bf16 %v75_v14, %v72_v11  ;;  %v35_v20 = vsel %vm34_vm3, %v31_v9, 63  ;;  %v84_v24 = vand.u32 4294901760, %v56_v21  ;;  %v87_v25 = vand.u32 4294901760, %v57_v22  ;;  %s981_s27 = scalar_lea.vmem %s653_s1, 256  ;;  %p986_p9 = scmp.lt.s32.totalorder %s653_s1, %s653_s1 }
  0x19   :  { %895 = vmatprep.subr.bf16.mxu0 %v1049_v16  ;;  %847 = vmatprep.subr.bf16.mxu1 %v1049_v16  ;;  %v1059_v23 = vpack.c.bf16 %v81_v18, %v78_v17  ;;  %v160_v26 = vsub.f32 %v50_v3, %v66_v5  ;;  %v167_v27 = vsub.f32 %v51_v4, %v69_v10  ;;  %v1011_v10 = vmov 0.0   ;;  %p982_p8 = scmp.ne.s32.totalorder %s653_s1, %s981_s27  ;;  %p987_p10 = scmp.lt.s32.totalorder %s981_s27, %s981_s27 }
  0x1a   :  { %897 = vmatpush3.bf16.msra.mxu0 %v1049_v16  ;;  %849 = vmatpush3.bf16.msra.mxu1 %v1049_v16  ;;  %v1065_v30 = vpack.c.bf16 %v87_v25, %v84_v24  ;;  %v174_v33 = vsub.f32 %v52_v6, %v72_v11  ;;  %v181_v34 = vsub.f32 %v53_v7, %v75_v14  ;;  %v36_v7 = vlaneseq }
  0x1b   :  { %899 = vmatprep.subr.bf16.mxu0 %v1051_v19  ;;  %851 = vmatprep.subr.bf16.mxu1 %v1051_v19  ;;  %v161_v28 = vand.u32 4294901760, %v160_v26  ;;  %v168_v29 = vand.u32 4294901760, %v167_v27  ;;  %v188_v44 = vsub.f32 %v54_v12, %v78_v17  ;;  %v195_v45 = vsub.f32 %v55_v13, %v81_v18  ;;  %p988_p11 = por %p987_p10, %p986_p9 }
  0x1c   :  { %42 = vperm.xlu0 %958, %v35_v20   ;;  %v175_v38 = vand.u32 4294901760, %v174_v33  ;;  %v182_v39 = vand.u32 4294901760, %v181_v34  ;;  %v202_v51 = vsub.f32 %v56_v21, %v84_v24  ;;  %v209_v52 = vsub.f32 %v57_v22, %v87_v25 }
  0x1d   :  { %v162_v31 = vsub.f32 %v160_v26, %v161_v28  ;;  %v169_v32 = vsub.f32 %v167_v27, %v168_v29  ;;  %v1069_v35 = vpack.c.bf16 %v168_v29, %v161_v28  ;;  %v189_v48 = vand.u32 4294901760, %v188_v44  ;;  %p989_p12 = pnand %p988_p11, %p982_p8 }
  0x1e   :  { %901 = vmatpush3.bf16.msra.mxu0 %v1051_v19  ;;  %853 = vmatpush3.bf16.msra.mxu1 %v1051_v19  ;;  %v914_v41 = vpack.c.bf16 %v182_v39, %v175_v38  ;;  %v176_v42 = vsub.f32 %v174_v33, %v175_v38  ;;  %v183_v43 = vsub.f32 %v181_v34, %v182_v39  ;;  %v196_v49 = vand.u32 4294901760, %v195_v45 }
  0x1f   :  { %903 = vmatprep.subr.bf16.mxu0 %v1059_v23  ;;  %855 = vmatprep.subr.bf16.mxu1 %v1059_v23  ;;  %v163_v36 = vand.u32 4294901760, %v162_v31  ;;  %v170_v37 = vand.u32 4294901760, %v169_v32  ;;  %v190_v54 = vsub.f32 %v188_v44, %v189_v48  ;;  %v203_v56 = vand.u32 4294901760, %v202_v51 }
  0x20   :  { %v177_v46 = vand.u32 4294901760, %v176_v42  ;;  %v184_v47 = vand.u32 4294901760, %v183_v43  ;;  %v918_v53 = vpack.c.bf16 %v196_v49, %v189_v48  ;;  %v197_v55 = vsub.f32 %v195_v45, %v196_v49 }
  0x21   :  { %v862_v40 = vpack.c.bf16 %v170_v37, %v163_v36  ;;  %v210_v57 = vand.u32 4294901760, %v209_v52  ;;  %v191_v58 = vand.u32 4294901760, %v190_v54  ;;  %v204_v61 = vsub.f32 %v202_v51, %v203_v56 }
  0x22   :  { %905 = vmatpush3.bf16.msra.mxu0 %v1059_v23  ;;  %857 = vmatpush3.bf16.msra.mxu1 %v1059_v23  ;;  %v866_v50 = vpack.c.bf16 %v184_v47, %v177_v46  ;;  %v198_v59 = vand.u32 4294901760, %v197_v55  ;;  %v878_v3 = vpack.c.bf16 %v167_v27, %v160_v26  ;;  %v882_v4 = vpack.c.bf16 %v181_v34, %v174_v33 }
  0x23   :  { %907 = vmatprep.subr.bf16.mxu0 %v1065_v30  ;;  %859 = vmatprep.subr.bf16.mxu1 %v1065_v30  ;;  %v922_v60 = vpack.c.bf16 %v210_v57, %v203_v56  ;;  %v211_v62 = vsub.f32 %v209_v52, %v210_v57  ;;  %v205_v0 = vand.u32 4294901760, %v204_v61  ;;  %v886_v5 = vpack.c.bf16 %v195_v45, %v188_v44 }
  0x24   :  { %v870_v63 = vpack.c.bf16 %v198_v59, %v191_v58  ;;  %v890_v6 = vpack.c.bf16 %v209_v52, %v202_v51  ;;  %v37_v8 = vand.u32 127, %v36_v7 }
  0x25   :  { %v212_v1 = vand.u32 4294901760, %v211_v62 }
  0x26   :  { %909 = vmatpush3.bf16.msra.mxu0 %v1065_v30  ;;  %861 = vmatpush3.bf16.msra.mxu1 %v1065_v30 }
  0x27   :  { %911 = vmatprep.subr.bf16.mxu0 %v1069_v35  ;;  %863 = vmatprep.subr.bf16.mxu1 %v862_v40  ;;  %v874_v2 = vpack.c.bf16 %v212_v1, %v205_v0 }
  0x97   :  { %v40_v9 = vpop.permute.xlu0 %39 }
  0x98   :  { %vm44_vm5 = vcmp.eq.s32.totalorder %v37_v8, %v40_v9 }
  0x99   :  { %v664_v11 = vsel %vm44_vm5, 1.0, %v1011_v10 }
  0x9a   :  { %v60_v12 = vsel %vm58_vm4, %v664_v11, 0 }
  0x9b   :  { %v139_v13 = vsub.f32 %v60_v12, %v60_v12  ;;  %v43_v14 = vpop.permute.xlu0 %42 }
  0x9c   :  { %vm45_vm6 = vcmp.eq.s32.totalorder %v37_v8, %v43_v14 }
  0x9d   :  { %v665_v15 = vsel %vm45_vm6, 1.0, %v1011_v10  ;;  %v140_v17 = vand.u32 4294901760, %v139_v13 }
  0x9e   :  { %v63_v18 = vsel %vm58_vm4, %v665_v15, 0 }
  0x9f   :  { %v149_v20 = vsub.f32 %v63_v18, %v63_v18  ;;  %805 = vmatprep.mubr.f32.mxu0 %v140_v17  ;;  %v141_v21 = vsub.f32 %v139_v13, %v140_v17 }
  0xa1   :  { %v142_v22 = vand.u32 4294901760, %v141_v21  ;;  %v150_v24 = vand.u32 4294901760, %v149_v20 }
  0xa3   :  { %748 = vmatprep.mubr.f32.mxu1 %v142_v22  ;;  %806 = vmatmul.mubr.f32.vlgmr.msra.gmra.mrb[0].mxu0 %v150_v24  ;;  %v151_v25 = vsub.f32 %v149_v20, %v150_v24 }
  0xa4   :  { %913 = vmatpush3.bf16.msra.mxu0 %v1069_v35  ;;  %824 = vmatprep.mubr.msk.f32.mxu0 %vm58_vm4, %v664_v11 }
  0xa5   :  { %915 = vmatprep.subr.bf16.mxu0 %v914_v41  ;;  %v152_v26 = vand.u32 4294901760, %v151_v25 }
  0xa7   :  { %749 = vmatmul.mubr.f32.vlgmr.msra.gmra.mrb[0].mxu1 %v152_v26 }
  0xa8   :  { %865 = vmatpush3.bf16.msra.mxu1 %v862_v40  ;;  %917 = vmatpush3.bf16.msra.mxu0 %v914_v41 }
  0xa9   :  { %767 = vmatprep.mubr.msk.f32.mxu1 %vm58_vm4, %v664_v11  ;;  %867 = vmatprep.subr.bf16.mxu1 %v866_v50 }
  0xaa   :  { %919 = vmatprep.subr.bf16.mxu0 %v918_v53 }
  0xac   :  { %869 = vmatpush3.bf16.msra.mxu1 %v866_v50  ;;  %921 = vmatpush3.bf16.msra.mxu0 %v918_v53 }
  0xad   :  { %871 = vmatprep.subr.bf16.mxu1 %v870_v63  ;;  %923 = vmatprep.subr.bf16.mxu0 %v922_v60 }
  0xb0   :  { %873 = vmatpush3.bf16.msra.mxu1 %v870_v63  ;;  %925 = vmatpush3.bf16.msra.mxu0 %v922_v60 }
  0xb1   :  { %875 = vmatprep.subr.bf16.mxu1 %v874_v2  ;;  %927 = vmatprep.subr.bf16.mxu0 %v1049_v16 }
  0xb3   :  { %825 = vmatmul.mubr.msk.f32.vlgmr.msra.gmra.mrb[0].mxu0 %vm58_vm4, %v665_v15 }
  0xb4   :  { %877 = vmatpush3.bf16.msra.mxu1 %v874_v2  ;;  %929 = vmatpush3.bf16.msra.mxu0 %v1049_v16 }
  0xb5   :  { %843 = vmatprep.mubr.msk.f32.mxu0 %vm58_vm4, %v664_v11  ;;  %879 = vmatprep.subr.bf16.mxu1 %v878_v3 }
  0xb6   :  { %931 = vmatprep.subr.bf16.mxu0 %v1051_v19 }
  0xb7   :  { %768 = vmatmul.mubr.msk.f32.vlgmr.msra.gmra.mrb[0].mxu1 %vm58_vm4, %v665_v15 }
  0xb8   :  { %881 = vmatpush3.bf16.msra.mxu1 %v878_v3  ;;  %786 = vmatprep.mubr.f32.mxu1 %v139_v13 }
  0xb9   :  { %933 = vmatpush3.bf16.msra.mxu0 %v1051_v19  ;;  %883 = vmatprep.subr.bf16.mxu1 %v882_v4 }
  0xba   :  { %935 = vmatprep.subr.bf16.mxu0 %v1059_v23 }
  0xbc   :  { %885 = vmatpush3.bf16.msra.mxu1 %v882_v4 }
  0xbd   :  { %937 = vmatpush3.bf16.msra.mxu0 %v1059_v23  ;;  %887 = vmatprep.subr.bf16.mxu1 %v886_v5 }
  0xbe   :  { %939 = vmatprep.subr.bf16.mxu0 %v1065_v30 }
  0xc0   :  { %889 = vmatpush3.bf16.msra.mxu1 %v886_v5 }
  0xc1   :  { %941 = vmatpush3.bf16.msra.mxu0 %v1065_v30  ;;  %891 = vmatprep.subr.bf16.mxu1 %v890_v6 }
  0xc4   :  { %844 = vmatmul.mubr.msk.f32.vlgmr.msra.gmra.mrb[0].mxu0 %vm58_vm4, %v665_v15  ;;  %893 = vmatpush3.bf16.msra.mxu1 %v890_v6 }
  0xc7   :  { %787 = vmatmul.mubr.f32.vlgmr.msra.gmra.mrb[0].mxu1 %v149_v20 }
 0x197   :  { %v845_v16 = vpop.f32.mrb[0].mxu0 }
 0x198   :  { %v635_v27 = vpop.f32.mrb[1].mxu0 }
 0x19a   :  { %v788_v19 = vpop.f32.mrb[0].mxu1 }
 0x19b   :  { %v942_v28 = vadd.f32 %v845_v16, %v788_v19  ;;  %v359_v29 = vpop.f32.mrb[1].mxu1 }
 0x19c   :  { %v943_v31 = vadd.f32 %v635_v27, %v359_v29 }
 0x19d   :  { %646 = vst [vmem:[#allocation5 + $0x8] sm:$0xff] %v942_v28 }
 0x19e   :  { %645 = vst [vmem:[#allocation5] sm:$0xff] %v943_v31 }
 0x19f   :  { %992 = shalt.err (!%p989_p12)
}
 0x1a0   :  { %s993_s30 = scalar_lea.hbm %s1110_s2, 256 }
 0x1a1   :  { %p994_p13 = scmp.ne.s32.totalorder %s1110_s2, %s993_s30  ;;  %p997_p0 = scmp.lt.u32.totalorder %s993_s30, %s1110_s2 }
 0x1a3   :  { %p999_p1 = pnand %p997_p0, %p994_p13 }
 0x1a5   :  { %1002 = shalt.err (!%p999_p1)
}
 0x1a6   :  { %658 = dma.vmem_to_hbm [thread:$0]  %s653_s1, 256, %s1110_s2, [#allocation4], %s1008_s19, %s1008_s19, %s1009_s20  }
 0x1a7   :  { %1005 = dma.done.wait [#allocation4], 256  }
 0x1a8   :  { %1006 = vsyncadd [#allocation4], 4294967040 }
 0x1a9   :  { %662 = vsyncpa [#allocation3], 1 }
 0x1aa   :  { %663 = vsyncpa [#allocation4], 1 }

</bundles_post_ra>
